<compile_context>
chip_gen: v5e
topology: v5e:2x2
jax: 0.10.0
libtpu: 0.0.40
codegen_flags: <defaults>
</compile_context>

<pallas_src>
import functools

import jax
import jax.numpy as jnp
from jax import lax
from jax.experimental import pallas as pl
from jax.experimental.pallas import tpu as pltpu


def _round_up(x, m):
    return (x + m - 1) // m * m


def _fold_bn(w, b, gamma, beta, mean, var, eps=1e-5):
    """Fold eval-mode BatchNorm1d into the preceding Linear."""
    scale = gamma / jnp.sqrt(var + eps)
    return w * scale[None, :], (b - mean) * scale + beta


def _vmem_capacity_bytes():
    try:
        return int(pltpu.get_tpu_info().vmem_capacity_bytes)
    except Exception:
        return 128 * 1024 * 1024


# ---------------------------------------------------------------------------
# Prologue: fused Linear + (folded) BN + ReLU over all source points.
# ---------------------------------------------------------------------------
def _linear_bn_relu_kernel(x_ref, w_ref, b_ref, o_ref):
    y = jnp.dot(x_ref[...], w_ref[...], preferred_element_type=jnp.float32)
    o_ref[...] = jnp.maximum(y + b_ref[...], 0.0).astype(o_ref.dtype)


def _linear_bn_relu(x2d, w, b, out_dtype):
    m, din = x2d.shape
    dout = w.shape[1]
    # m is a multiple of 128 by construction (N1 padded); pick the largest tile.
    tm = next(t for t in (1024, 512, 384, 256, 128) if t <= m and m % t == 0)
    return pl.pallas_call(
        _linear_bn_relu_kernel,
        out_shape=jax.ShapeDtypeStruct((m, dout), out_dtype),
        grid=(m // tm,),
        in_specs=[
            pl.BlockSpec((tm, din), lambda i: (i, 0)),
            pl.BlockSpec((din, dout), lambda i: (0, 0)),
            pl.BlockSpec((1, dout), lambda i: (0, 0)),
        ],
        out_specs=pl.BlockSpec((tm, dout), lambda i: (i, 0)),
        compiler_params=pltpu.CompilerParams(
            dimension_semantics=("parallel",)),
    )(x2d, w, b)


# ---------------------------------------------------------------------------
# Main kernel: fc2(dst tile) + 3-NN inverse-distance interpolation of the
# precomputed source features, stored as a lane-dense packed slab.
# ---------------------------------------------------------------------------
def _interp_add_kernel(xyz_dst_ref,    # (1, TN, 3)      target coords (tile)
                       xyz_src_t_ref,  # (1, 3, N_src)   source coords, lane-dense
                       fsrc_ref,       # (1, N_src, Dout) precomputed fc1 feats
                       pts_dst_ref,    # (1, TN, D2)     raw target features
                       w2_ref, b2_ref,  # (D2, Dout), (1, Dout)
                       o_ref,          # packed (1, TN/groups, 128) or (1, TN, Dout)
                       res_ref,        # scratch (TN, Dout) f32 staging buffer
                       *, pack_out, groups):
    # fc2 (Linear + folded BN + ReLU) on this tile of target points.
    f2 = jnp.dot(pts_dst_ref[0], w2_ref[...],
                 preferred_element_type=jnp.float32)
    f2 = jnp.maximum(f2 + b2_ref[...], 0.0)                       # (TN, Dout)

    # Squared pairwise distances with per-coordinate VPU broadcasts against a
    # lane-dense (3, N_src) coordinate layout; d >= 0 by construction.
    a = xyz_dst_ref[0]                                            # (TN, 3)
    bt = xyz_src_t_ref[0]                                         # (3, N_src)
    n_dst = a.shape[0]
    n_src = bt.shape[1]
    d = jnp.zeros((n_dst, n_src), jnp.float32)
    for k in range(3):
        diff = a[:, k:k + 1] - bt[k:k + 1, :]                     # (TN, N_src)
        d = d + diff * diff

    # 3-NN inverse-distance weights: one cross-lane min per iteration (the
    # tie-break index reduction and the full iota matrix were removed).
    # Padded source columns carry huge sentinel coordinates so they can never
    # become the minimum; exactly-duplicated real points would merge weights.
    big = jnp.float32(1e30)
    running = d
    wsum = jnp.zeros((n_dst, n_src), jnp.float32)
    norm = jnp.zeros((n_dst, 1), jnp.float32)
    for _ in range(3):                           # static unroll: 3 nearest
        m = jnp.min(running, axis=-1, keepdims=True)              # (TN, 1)
        onehot = running == m
        recip = 1.0 / (m + 1e-8)
        wsum = wsum + jnp.where(onehot, recip, 0.0)
        norm = norm + recip
        running = jnp.where(onehot, big, running)

    # Sparse-weight matmul against the precomputed source features (bf16 MXU
    # path when features are stored bf16); normalize the small result after.
    fsrc = fsrc_ref[0]
    interp = jnp.dot(wsum.astype(fsrc.dtype), fsrc,
                     preferred_element_type=jnp.float32)
    res = interp * (1.0 / norm) + f2                              # (TN, Dout)

    if pack_out:
        # Lane-dense store: stage in VMEM, regroup `groups` consecutive rows
        # into the 128-lane axis (strided ref reads + lane concat), then store
        # one dense (TN/groups, 128) slab.  Wrapper undoes it with a reshape.
        res_ref[...] = res
        rows = o_ref.shape[1]
        pieces = [res_ref[pl.ds(g, rows, stride=groups), :]
                  for g in range(groups)]
        o_ref[0] = jnp.concatenate(pieces, axis=-1).astype(o_ref.dtype)
    else:
        o_ref[0] = res.astype(o_ref.dtype)


# ---------------------------------------------------------------------------
# Wrapper: BN fold, padding, layout prep, tiling, pallas_calls.
# ---------------------------------------------------------------------------
def transition_up(params, xyz1, points1, xyz2, points2, *,
                  dst_tile=None, feature_dtype=None, out_dtype=None, eps=1e-5):
    """feats2 + 3NN-interp(feats1 @ xyz1 -> xyz2), feats_i = ReLU(BN(Linear))."""
    B, N1, _ = xyz1.shape
    _, N2, _ = xyz2.shape
    D1 = points1.shape[-1]
    D2 = points2.shape[-1]

    w1, b1 = _fold_bn(*params["fc1"], eps=eps)
    w2, b2 = _fold_bn(*params["fc2"], eps=eps)
    Dout = w1.shape[1]

    # Optional bf16 feature storage (v6e/v7x): halves HBM bytes and runs the
    # interp matmul at full MXU rate.  Coordinates and selection math stay f32.
    if feature_dtype is not None:
        points1 = points1.astype(feature_dtype)
        points2 = points2.astype(feature_dtype)
        w1 = w1.astype(feature_dtype)
        w2 = w2.astype(feature_dtype)
    if out_dtype is None:
        out_dtype = points1.dtype
    feat_dtype = points1.dtype

    xyz1 = xyz1.astype(jnp.float32)
    xyz2 = xyz2.astype(jnp.float32)
    b1 = b1.astype(jnp.float32).reshape(1, Dout)
    b2 = b2.astype(jnp.float32).reshape(1, Dout)

    # --- source side: pad N1 to a 128-lane multiple.  Sentinel coordinates
    #     keep padded columns out of the 3-NN; their features get weight 0.
    n1p = _round_up(N1, 128)
    if n1p != N1:
        pad = n1p - N1
        xyz1 = jnp.pad(xyz1, ((0, 0), (0, pad), (0, 0)), constant_values=1e6)
        points1 = jnp.pad(points1, ((0, 0), (0, pad), (0, 0)))
    xyz1_t = jnp.transpose(xyz1, (0, 2, 1))                  # (B, 3, N1p)

    # --- prologue: fc1 over all source points in one well-shaped matmul.
    fsrc = _linear_bn_relu(points1.reshape(B * n1p, D1), w1, b1, feat_dtype)
    fsrc = fsrc.reshape(B, n1p, Dout)

    # --- lane-dense output packing parameters.
    feat_sub = 16 if jnp.dtype(feat_dtype).itemsize < 4 else 8
    out_sub = 16 if jnp.dtype(out_dtype).itemsize < 4 else 8
    pack = Dout < 128 and 128 % Dout == 0
    groups = 128 // Dout if pack else 1
    row_mult = max(8, feat_sub, groups * out_sub if pack else out_sub)

    # --- generation-dependent tiling / VMEM budget (v7x 64 MiB vs 128 MiB).
    vmem_cap = _vmem_capacity_bytes()
    vmem_limit = min((vmem_cap * 3) // 4, 96 * 1024 * 1024)
    if dst_tile is None:
        dst_tile = 512 if vmem_cap >= (96 << 20) else 256
    max_tn = max(row_mult,
                 (vmem_limit // 3) // (6 * 4 * n1p) // row_mult * row_mult)
    tn = min(dst_tile, _round_up(N2, row_mult), max_tn)
    tn = _round_up(max(tn, row_mult), row_mult)

    n2p = _round_up(N2, tn)
    if n2p != N2:
        pad = n2p - N2
        xyz2 = jnp.pad(xyz2, ((0, 0), (0, pad), (0, 0)))
        points2 = jnp.pad(points2, ((0, 0), (0, pad), (0, 0)))

    if pack:
        out_shape = jax.ShapeDtypeStruct((B, n2p // groups, 128), out_dtype)
        out_spec = pl.BlockSpec((1, tn // groups, 128), lambda b, j: (b, j, 0))
    else:
        out_shape = jax.ShapeDtypeStruct((B, n2p, Dout), out_dtype)
        out_spec = pl.BlockSpec((1, tn, Dout), lambda b, j: (b, j, 0))

    kernel = functools.partial(_interp_add_kernel, pack_out=pack, groups=groups)

    out = pl.pallas_call(
        kernel,
        out_shape=out_shape,
        grid=(B, n2p // tn),
        in_specs=[
            pl.BlockSpec((1, tn, 3), lambda b, j: (b, j, 0)),      # xyz_dst tile
            pl.BlockSpec((1, 3, n1p), lambda b, j: (b, 0, 0)),     # xyz_src (lane-dense)
            pl.BlockSpec((1, n1p, Dout), lambda b, j: (b, 0, 0)),  # fc1 source feats
            pl.BlockSpec((1, tn, D2), lambda b, j: (b, j, 0)),     # pts_dst tile
            pl.BlockSpec((D2, Dout), lambda b, j: (0, 0)),         # fc2 weight
            pl.BlockSpec((1, Dout), lambda b, j: (0, 0)),          # fc2 bias
        ],
        out_specs=out_spec,
        scratch_shapes=[pltpu.VMEM((tn, Dout), jnp.float32)],
        compiler_params=pltpu.CompilerParams(
            dimension_semantics=("parallel", "parallel"),
            vmem_limit_bytes=vmem_limit,
        ),
    )(xyz2, xyz1_t, fsrc, points2, w2, b2)

    if pack:
        out = out.reshape(B, n2p, Dout)
    return out[:, :N2, :]


# ---------------------------------------------------------------------------
# Pure-JAX reference for the correctness check.
# ---------------------------------------------------------------------------
def _reference(params, xyz1, points1, xyz2, points2):
    def fc(x, w, b, g, be, m, v, eps=1e-5):
        y = x @ w + b
        y = (y - m) / jnp.sqrt(v + eps) * g + be
        return jnp.maximum(y, 0.0)
    f1 = fc(points1, *params["fc1"])
    f2 = fc(points2, *params["fc2"])
    d = jnp.sum((xyz2[:, :, None, :] - xyz1[:, None, :, :]) ** 2, axis=-1)
    neg_top, idx = lax.top_k(-d, 3)
    dists = -neg_top
    recip = 1.0 / (dists + 1e-8)
    w = recip / jnp.sum(recip, axis=-1, keepdims=True)
    gathered = jax.vmap(lambda f, i: f[i])(f1, idx)
    interp = jnp.sum(gathered * w[..., None], axis=2)
    return interp + f2


if __name__ == "__main__":
    key = jax.random.PRNGKey(0)
    B, N1, N2 = 2, 16, 64          # N1 coarse (source) points, N2 dense (target)
    dim1, dim2, dim_out = 32, 16, 32
    keys = jax.random.split(key, 16)

    xyz1 = jax.random.normal(keys[0], (B, N1, 3), jnp.float32)
    points1 = jax.random.normal(keys[1], (B, N1, dim1), jnp.float32)
    xyz2 = jax.random.normal(keys[2], (B, N2, 3), jnp.float32)
    points2 = jax.random.normal(keys[3], (B, N2, dim2), jnp.float32)

    def make_fc(kw, kb, kg, kbe, km, kv, din, dout):
        w = jax.random.normal(kw, (din, dout), jnp.float32) / jnp.sqrt(float(din))
        b = 0.1 * jax.random.normal(kb, (dout,), jnp.float32)
        g = 1.0 + 0.1 * jax.random.normal(kg, (dout,), jnp.float32)
        be = 0.1 * jax.random.normal(kbe, (dout,), jnp.float32)
        m = 0.1 * jax.random.normal(km, (dout,), jnp.float32)
        v = jnp.abs(jax.random.normal(kv, (dout,), jnp.float32)) * 0.5 + 0.5
        return (w, b, g, be, m, v)

    params = {
        "fc1": make_fc(*list(keys[4:10]), dim1, dim_out),
        "fc2": make_fc(*list(keys[10:16]), dim2, dim_out),
    }

    ref = _reference(params, xyz1, points1, xyz2, points2)

    # f32 path, default (generation-dependent) tiling, lane-dense packed out.
    out = transition_up(params, xyz1, points1, xyz2, points2)
    out = jax.block_until_ready(out)
    assert out.shape == (B, N2, dim_out), out.shape
    assert jnp.allclose(out, ref, rtol=1e-4, atol=1e-4), \
        float(jnp.max(jnp.abs(out - ref)))

    # f32 path with forced target tiling (exercises multi-tile + padding and
    # the per-tile packed output blocks).
    out_t = transition_up(params, xyz1, points1, xyz2, points2, dst_tile=24)
    out_t = jax.block_until_ready(out_t)
    assert jnp.allclose(out_t, ref, rtol=1e-4, atol=1e-4), \
        float(jnp.max(jnp.abs(out_t - ref)))

    # bf16 feature-storage path (bf16 fsrc + bf16 interp matmul); loose tol.
    out_bf = transition_up(params, xyz1, points1, xyz2, points2,
                           feature_dtype=jnp.bfloat16)
    out_bf = jax.block_until_ready(out_bf)
    assert out_bf.shape == (B, N2, dim_out)
    assert float(jnp.max(jnp.abs(out_bf.astype(jnp.float32) - ref))) < 0.25

    print("KERNEL_OK")
</pallas_src>

<mosaic_0001>
module attributes {stable_mosaic.version = 11 : i64} {
  func.func @_linear_bn_relu_kernel(%arg0: i32, %arg1: memref<256x32xf32, #tpu.memory_space<vmem>>, %arg2: memref<32x32xf32, #tpu.memory_space<vmem>>, %arg3: memref<1x32xf32, #tpu.memory_space<vmem>>, %arg4: memref<256x32xf32, #tpu.memory_space<vmem>>) attributes {dimension_semantics = [#tpu.dimension_semantics<parallel>], iteration_bounds = array<i64: 1>, scalar_prefetch = 0 : i64, scratch_operands = 0 : i64, tpu.core_type = #tpu.core_type<tc>, window_params = [{transform_indices = @transform_0, window_bounds = array<i64: 256, 32>}, {pipeline_mode = #tpu.pipeline_mode<synchronous>, transform_indices = @transform_1, window_bounds = array<i64: 32, 32>}, {pipeline_mode = #tpu.pipeline_mode<synchronous>, transform_indices = @transform_2, window_bounds = array<i64: 1, 32>}, {transform_indices = @transform_3, window_bounds = array<i64: 256, 32>}]} {
    %c0 = arith.constant 0 : index
    %c0_0 = arith.constant 0 : index
    %0 = vector.load %arg1[%c0, %c0_0] : memref<256x32xf32, #tpu.memory_space<vmem>>, vector<256x32xf32>
    %c0_1 = arith.constant 0 : index
    %c0_2 = arith.constant 0 : index
    %1 = vector.load %arg2[%c0_1, %c0_2] : memref<32x32xf32, #tpu.memory_space<vmem>>, vector<32x32xf32>
    %cst = arith.constant dense<0.000000e+00> : vector<256x32xf32>
    %2 = tpu.matmul %0, %1, %cst {dimension_numbers = #tpu.dot_dimension_numbers<[1], [0], [0], [1], [0, 0, 1, 1], [], []>} : vector<256x32xf32>, vector<32x32xf32>, vector<256x32xf32> -> vector<256x32xf32>
    %c0_3 = arith.constant 0 : index
    %c0_4 = arith.constant 0 : index
    %3 = vector.load %arg3[%c0_3, %c0_4] : memref<1x32xf32, #tpu.memory_space<vmem>>, vector<1x32xf32>
    %4 = vector.broadcast %3 : vector<1x32xf32> to vector<256x32xf32>
    %5 = arith.addf %2, %4 : vector<256x32xf32>
    %cst_5 = arith.constant 0.000000e+00 : f32
    %6 = vector.broadcast %cst_5 : f32 to vector<256x32xf32>
    %7 = arith.maximumf %5, %6 : vector<256x32xf32>
    %c0_6 = arith.constant 0 : index
    %c0_7 = arith.constant 0 : index
    %8 = vector.load %arg4[%c0_6, %c0_7] : memref<256x32xf32, #tpu.memory_space<vmem>>, vector<256x32xf32>
    tpu.vector_store %arg4[%c0_6, %c0_7], %7 {strides = array<i32>} : memref<256x32xf32, #tpu.memory_space<vmem>>, vector<256x32xf32>,
    return
  }
  func.func @transform_0(%arg0: i32) -> (i32, i32) {
    %c0_i32 = arith.constant 0 : i32
    %c0_i32_0 = arith.constant 0 : i32
    return %arg0, %c0_i32 : i32, i32
  }
  func.func @transform_1(%arg0: i32) -> (i32, i32) {
    %c0_i32 = arith.constant 0 : i32
    %c0_i32_0 = arith.constant 0 : i32
    %c0_i32_1 = arith.constant 0 : i32
    return %c0_i32, %c0_i32_0 : i32, i32
  }
  func.func @transform_2(%arg0: i32) -> (i32, i32) {
    %c0_i32 = arith.constant 0 : i32
    %c0_i32_0 = arith.constant 0 : i32
    %c0_i32_1 = arith.constant 0 : i32
    return %c0_i32, %c0_i32_0 : i32, i32
  }
  func.func @transform_3(%arg0: i32) -> (i32, i32) {
    %c0_i32 = arith.constant 0 : i32
    %c0_i32_0 = arith.constant 0 : i32
    return %arg0, %c0_i32 : i32, i32
  }
}

</mosaic_0001>

<bundles_post_ra>
// kernel: tpu_custom_call.1
= control target key start
LH: loop header
LB: loop body
LE: loop exit
PB: predicated region body
PF: predicated region fallthrough
CT: control target
= control target key end

     0   :  { %vm54_vm0 = vcmask 261120   ;;  %s702_s1 = inlined_call_operand.vmem [shape: f32[32,32], index: 1, kind: input, shape index: {}]   ;;  %s703_s0 = inlined_call_operand.vmem [shape: f32[256,32], index: 0, kind: input, shape index: {}]   ;;  %s704_s2 = inlined_call_operand.vmem [shape: f32[1,32], index: 2, kind: input, shape index: {}]   ;;  %s705_s3 = inlined_call_operand.vmem [shape: f32[256,32], index: 3, kind: output, shape index: {}]  }
   0x1   :  { %v49_v0 = vld [vmem:[%s702_s1 + $0x18] sm:$0xff]  ;;  %v48_v1 = vld [vmem:[%s702_s1 + $0x10] sm:$0xff]  ;;  %v47_v2 = vld [vmem:[%s702_s1 + $0x8] sm:$0xff] }
   0x2   :  { %365 = vmatpush.msra.mxu2 %v49_v0  ;;  %366 = vmatpush.msra.mxu3 %v49_v0  ;;  %v46_v3 = vld [vmem:[%s702_s1] sm:$0xff]  ;;  %v31_v8 = vld [vmem:[%s703_s0 + $0x88] sm:$0xff]  ;;  %v32_v12 = vld [vmem:[%s703_s0 + $0x90] sm:$0xff] }
   0x3   :  { %163 = vmatpush.msra.mxu0 %v49_v0  ;;  %364 = vmatpush.msra.mxu1 %v49_v0  ;;  %v30_v4 = vld [vmem:[%s703_s0 + $0x80] sm:$0xff]  ;;  %v39_v9 = vld [vmem:[%s703_s0 + $0xc8] sm:$0xff]  ;;  %v40_v13 = vld [vmem:[%s703_s0 + $0xd0] sm:$0xff] }
   0x4   :  { %368 = vmatpush.msra.mxu2 %v48_v1  ;;  %369 = vmatpush.msra.mxu3 %v48_v1  ;;  %v38_v5 = vld [vmem:[%s703_s0 + $0xc0] sm:$0xff]  ;;  %v15_v10 = vld [vmem:[%s703_s0 + $0x8] sm:$0xff]  ;;  %v16_v14 = vld [vmem:[%s703_s0 + $0x10] sm:$0xff] }
   0x5   :  { %164 = vmatpush.msra.mxu0 %v48_v1  ;;  %367 = vmatpush.msra.mxu1 %v48_v1  ;;  %v14_v6 = vld [vmem:[%s703_s0] sm:$0xff]  ;;  %v23_v11 = vld [vmem:[%s703_s0 + $0x48] sm:$0xff]  ;;  %v24_v15 = vld [vmem:[%s703_s0 + $0x50] sm:$0xff] }
   0x6   :  { %371 = vmatpush.msra.mxu2 %v47_v2  ;;  %372 = vmatpush.msra.mxu3 %v47_v2  ;;  %v22_v7 = vld [vmem:[%s703_s0 + $0x40] sm:$0xff]  ;;  %v33_v16 = vld [vmem:[%s703_s0 + $0x98] sm:$0xff]  ;;  %v35_v24 = vld [vmem:[%s703_s0 + $0xa8] sm:$0xff] }
   0x7   :  { %165 = vmatpush.msra.mxu0 %v47_v2  ;;  %370 = vmatpush.msra.mxu1 %v47_v2  ;;  %v41_v17 = vld [vmem:[%s703_s0 + $0xd8] sm:$0xff]  ;;  %v34_v20 = vld [vmem:[%s703_s0 + $0xa0] sm:$0xff]  ;;  %v43_v25 = vld [vmem:[%s703_s0 + $0xe8] sm:$0xff] }
   0x8   :  { %374 = vmatpush.msra.mxu2 %v46_v3  ;;  %375 = vmatpush.msra.mxu3 %v46_v3  ;;  %v17_v18 = vld [vmem:[%s703_s0 + $0x18] sm:$0xff]  ;;  %v42_v21 = vld [vmem:[%s703_s0 + $0xe0] sm:$0xff]  ;;  %v19_v26 = vld [vmem:[%s703_s0 + $0x28] sm:$0xff] }
   0x9   :  { %348 = vmatmul.msk.f32.vlgmr.msra.gmra.mxu2 %vm54_vm0, %v30_v4  ;;  %356 = vmatmul.msk.f32.vlgmr.msra.gmra.mxu3 %vm54_vm0, %v38_v5  ;;  %v25_v19 = vld [vmem:[%s703_s0 + $0x58] sm:$0xff]  ;;  %v18_v22 = vld [vmem:[%s703_s0 + $0x20] sm:$0xff]  ;;  %v27_v27 = vld [vmem:[%s703_s0 + $0x68] sm:$0xff] }
   0xa   :  { %166 = vmatpush.msra.mxu0 %v46_v3  ;;  %373 = vmatpush.msra.mxu1 %v46_v3  ;;  %v26_v23 = vld [vmem:[%s703_s0 + $0x60] sm:$0xff]  ;;  %v36_v28 = vld [vmem:[%s703_s0 + $0xb0] sm:$0xff]  ;;  %v37_v32 = vld [vmem:[%s703_s0 + $0xb8] sm:$0xff] }
   0xb   :  { %332 = vmatmul.msk.f32.vlgmr.msra.gmra.mxu0 %vm54_vm0, %v14_v6  ;;  %340 = vmatmul.msk.f32.vlgmr.msra.gmra.mxu1 %vm54_vm0, %v22_v7  ;;  %v44_v29 = vld [vmem:[%s703_s0 + $0xf0] sm:$0xff]  ;;  %v45_v33 = vld [vmem:[%s703_s0 + $0xf8] sm:$0xff]  ;;  %v540_v36 = vld [vmem:[%s704_s2] ss:$0 sm:$0xff] }
   0xc   :  { %v20_v30 = vld [vmem:[%s703_s0 + $0x30] sm:$0xff]  ;;  %v21_v34 = vld [vmem:[%s703_s0 + $0x38] sm:$0xff] }
   0xd   :  { %v28_v31 = vld [vmem:[%s703_s0 + $0x70] sm:$0xff]  ;;  %v29_v35 = vld [vmem:[%s703_s0 + $0x78] sm:$0xff] }
  0x11   :  { %349 = vmatmul.msk.f32.gmra.mxu2 %vm54_vm0, %v31_v8  ;;  %357 = vmatmul.msk.f32.gmra.mxu3 %vm54_vm0, %v39_v9 }
  0x13   :  { %333 = vmatmul.msk.f32.gmra.mxu0 %vm54_vm0, %v15_v10  ;;  %341 = vmatmul.msk.f32.gmra.mxu1 %vm54_vm0, %v23_v11 }
  0x19   :  { %350 = vmatmul.msk.f32.gmra.mxu2 %vm54_vm0, %v32_v12  ;;  %358 = vmatmul.msk.f32.gmra.mxu3 %vm54_vm0, %v40_v13 }
  0x1b   :  { %334 = vmatmul.msk.f32.gmra.mxu0 %vm54_vm0, %v16_v14  ;;  %342 = vmatmul.msk.f32.gmra.mxu1 %vm54_vm0, %v24_v15 }
  0x21   :  { %351 = vmatmul.msk.f32.gmra.mxu2 %vm54_vm0, %v33_v16  ;;  %359 = vmatmul.msk.f32.gmra.mxu3 %vm54_vm0, %v41_v17 }
  0x23   :  { %335 = vmatmul.msk.f32.gmra.mxu0 %vm54_vm0, %v17_v18  ;;  %343 = vmatmul.msk.f32.gmra.mxu1 %vm54_vm0, %v25_v19 }
  0x29   :  { %352 = vmatmul.msk.f32.gmra.mxu2 %vm54_vm0, %v34_v20  ;;  %360 = vmatmul.msk.f32.gmra.mxu3 %vm54_vm0, %v42_v21 }
  0x2b   :  { %336 = vmatmul.msk.f32.gmra.mxu0 %vm54_vm0, %v18_v22  ;;  %344 = vmatmul.msk.f32.gmra.mxu1 %vm54_vm0, %v26_v23 }
  0x31   :  { %353 = vmatmul.msk.f32.gmra.mxu2 %vm54_vm0, %v35_v24  ;;  %361 = vmatmul.msk.f32.gmra.mxu3 %vm54_vm0, %v43_v25 }
  0x33   :  { %337 = vmatmul.msk.f32.gmra.mxu0 %vm54_vm0, %v19_v26  ;;  %345 = vmatmul.msk.f32.gmra.mxu1 %vm54_vm0, %v27_v27 }
  0x39   :  { %354 = vmatmul.msk.f32.gmra.mxu2 %vm54_vm0, %v36_v28  ;;  %362 = vmatmul.msk.f32.gmra.mxu3 %vm54_vm0, %v44_v29 }
  0x3b   :  { %338 = vmatmul.msk.f32.gmra.mxu0 %vm54_vm0, %v20_v30  ;;  %346 = vmatmul.msk.f32.gmra.mxu1 %vm54_vm0, %v28_v31 }
  0x41   :  { %355 = vmatmul.msk.f32.gmra.mxu2 %vm54_vm0, %v37_v32  ;;  %363 = vmatmul.msk.f32.gmra.mxu3 %vm54_vm0, %v45_v33 }
  0x43   :  { %339 = vmatmul.msk.f32.gmra.mxu0 %vm54_vm0, %v21_v34  ;;  %347 = vmatmul.msk.f32.gmra.mxu1 %vm54_vm0, %v29_v35 }
  0x88   :  { %v168_v37 = vpop.f32.mrf.mxu0  ;;  %v192_v38 = vpop.f32.mrf.mxu1 }
  0x89   :  { %v169_v39 = vadd.f32 %v540_v36, %v168_v37  ;;  %v193_v40 = vadd.f32 %v540_v36, %v192_v38 }
  0x8b   :  { %v264_v41 = vmax.f32 %v169_v39, 0.0  ;;  %v272_v42 = vmax.f32 %v193_v40, 0.0 }
  0x8c   :  { %v216_v43 = vpop.f32.mrf.mxu2  ;;  %v240_v44 = vpop.f32.mrf.mxu3 }
  0x8d   :  { %296 = vst.msk [vmem:[%s705_s3] sm:$0xff] %vm54_vm0, %v264_v41  ;;  %v217_v45 = vadd.f32 %v540_v36, %v216_v43  ;;  %v241_v46 = vadd.f32 %v540_v36, %v240_v44 }
  0x8e   :  { %304 = vst.msk [vmem:[%s705_s3 + $0x40] sm:$0xff] %vm54_vm0, %v272_v42 }
  0x8f   :  { %v280_v47 = vmax.f32 %v217_v45, 0.0  ;;  %v288_v48 = vmax.f32 %v241_v46, 0.0 }
  0x90   :  { %v171_v49 = vpop.f32.mrf.mxu0  ;;  %v195_v50 = vpop.f32.mrf.mxu1 }
  0x91   :  { %312 = vst.msk [vmem:[%s705_s3 + $0x80] sm:$0xff] %vm54_vm0, %v280_v47  ;;  %v172_v51 = vadd.f32 %v540_v36, %v171_v49  ;;  %v196_v52 = vadd.f32 %v540_v36, %v195_v50 }
  0x92   :  { %320 = vst.msk [vmem:[%s705_s3 + $0xc0] sm:$0xff] %vm54_vm0, %v288_v48 }
  0x93   :  { %v265_v53 = vmax.f32 %v172_v51, 0.0  ;;  %v273_v54 = vmax.f32 %v196_v52, 0.0 }
  0x94   :  { %v219_v55 = vpop.f32.mrf.mxu2  ;;  %v243_v56 = vpop.f32.mrf.mxu3 }
  0x95   :  { %297 = vst.msk [vmem:[%s705_s3 + $0x8] sm:$0xff] %vm54_vm0, %v265_v53  ;;  %v220_v57 = vadd.f32 %v540_v36, %v219_v55  ;;  %v244_v58 = vadd.f32 %v540_v36, %v243_v56 }
  0x96   :  { %305 = vst.msk [vmem:[%s705_s3 + $0x48] sm:$0xff] %vm54_vm0, %v273_v54 }
  0x97   :  { %v281_v59 = vmax.f32 %v220_v57, 0.0  ;;  %v289_v60 = vmax.f32 %v244_v58, 0.0 }
  0x98   :  { %v174_v61 = vpop.f32.mrf.mxu0  ;;  %v198_v62 = vpop.f32.mrf.mxu1 }
  0x99   :  { %313 = vst.msk [vmem:[%s705_s3 + $0x88] sm:$0xff] %vm54_vm0, %v281_v59  ;;  %v175_v63 = vadd.f32 %v540_v36, %v174_v61  ;;  %v199_v0 = vadd.f32 %v540_v36, %v198_v62 }
  0x9a   :  { %321 = vst.msk [vmem:[%s705_s3 + $0xc8] sm:$0xff] %vm54_vm0, %v289_v60 }
  0x9b   :  { %v266_v1 = vmax.f32 %v175_v63, 0.0  ;;  %v274_v2 = vmax.f32 %v199_v0, 0.0 }
  0x9c   :  { %v222_v3 = vpop.f32.mrf.mxu2  ;;  %v246_v4 = vpop.f32.mrf.mxu3 }
  0x9d   :  { %298 = vst.msk [vmem:[%s705_s3 + $0x10] sm:$0xff] %vm54_vm0, %v266_v1  ;;  %v223_v5 = vadd.f32 %v540_v36, %v222_v3  ;;  %v247_v6 = vadd.f32 %v540_v36, %v246_v4 }
  0x9e   :  { %306 = vst.msk [vmem:[%s705_s3 + $0x50] sm:$0xff] %vm54_vm0, %v274_v2 }
  0x9f   :  { %v282_v7 = vmax.f32 %v223_v5, 0.0  ;;  %v290_v8 = vmax.f32 %v247_v6, 0.0 }
  0xa0   :  { %v177_v9 = vpop.f32.mrf.mxu0  ;;  %v201_v10 = vpop.f32.mrf.mxu1 }
  0xa1   :  { %314 = vst.msk [vmem:[%s705_s3 + $0x90] sm:$0xff] %vm54_vm0, %v282_v7  ;;  %v178_v11 = vadd.f32 %v540_v36, %v177_v9  ;;  %v202_v12 = vadd.f32 %v540_v36, %v201_v10 }
  0xa2   :  { %322 = vst.msk [vmem:[%s705_s3 + $0xd0] sm:$0xff] %vm54_vm0, %v290_v8 }
  0xa3   :  { %v267_v13 = vmax.f32 %v178_v11, 0.0  ;;  %v275_v14 = vmax.f32 %v202_v12, 0.0 }
  0xa4   :  { %v225_v15 = vpop.f32.mrf.mxu2  ;;  %v249_v16 = vpop.f32.mrf.mxu3 }
  0xa5   :  { %299 = vst.msk [vmem:[%s705_s3 + $0x18] sm:$0xff] %vm54_vm0, %v267_v13  ;;  %v226_v17 = vadd.f32 %v540_v36, %v225_v15  ;;  %v250_v18 = vadd.f32 %v540_v36, %v249_v16 }
  0xa6   :  { %307 = vst.msk [vmem:[%s705_s3 + $0x58] sm:$0xff] %vm54_vm0, %v275_v14 }
  0xa7   :  { %v283_v19 = vmax.f32 %v226_v17, 0.0  ;;  %v291_v20 = vmax.f32 %v250_v18, 0.0 }
  0xa8   :  { %v180_v21 = vpop.f32.mrf.mxu0  ;;  %v204_v22 = vpop.f32.mrf.mxu1 }
  0xa9   :  { %315 = vst.msk [vmem:[%s705_s3 + $0x98] sm:$0xff] %vm54_vm0, %v283_v19  ;;  %v181_v23 = vadd.f32 %v540_v36, %v180_v21  ;;  %v205_v24 = vadd.f32 %v540_v36, %v204_v22 }
  0xaa   :  { %323 = vst.msk [vmem:[%s705_s3 + $0xd8] sm:$0xff] %vm54_vm0, %v291_v20 }
  0xab   :  { %v268_v25 = vmax.f32 %v181_v23, 0.0  ;;  %v276_v26 = vmax.f32 %v205_v24, 0.0 }
  0xac   :  { %v228_v27 = vpop.f32.mrf.mxu2  ;;  %v252_v28 = vpop.f32.mrf.mxu3 }
  0xad   :  { %300 = vst.msk [vmem:[%s705_s3 + $0x20] sm:$0xff] %vm54_vm0, %v268_v25  ;;  %v229_v29 = vadd.f32 %v540_v36, %v228_v27  ;;  %v253_v30 = vadd.f32 %v540_v36, %v252_v28 }
  0xae   :  { %308 = vst.msk [vmem:[%s705_s3 + $0x60] sm:$0xff] %vm54_vm0, %v276_v26 }
  0xaf   :  { %v284_v31 = vmax.f32 %v229_v29, 0.0  ;;  %v292_v32 = vmax.f32 %v253_v30, 0.0 }
  0xb0   :  { %v183_v33 = vpop.f32.mrf.mxu0  ;;  %v207_v34 = vpop.f32.mrf.mxu1 }
  0xb1   :  { %316 = vst.msk [vmem:[%s705_s3 + $0xa0] sm:$0xff] %vm54_vm0, %v284_v31  ;;  %v184_v35 = vadd.f32 %v540_v36, %v183_v33  ;;  %v208_v37 = vadd.f32 %v540_v36, %v207_v34 }
  0xb2   :  { %324 = vst.msk [vmem:[%s705_s3 + $0xe0] sm:$0xff] %vm54_vm0, %v292_v32 }
  0xb3   :  { %v269_v38 = vmax.f32 %v184_v35, 0.0  ;;  %v277_v39 = vmax.f32 %v208_v37, 0.0 }
  0xb4   :  { %v231_v40 = vpop.f32.mrf.mxu2  ;;  %v255_v41 = vpop.f32.mrf.mxu3 }
  0xb5   :  { %301 = vst.msk [vmem:[%s705_s3 + $0x28] sm:$0xff] %vm54_vm0, %v269_v38  ;;  %v232_v42 = vadd.f32 %v540_v36, %v231_v40  ;;  %v256_v43 = vadd.f32 %v540_v36, %v255_v41 }
  0xb6   :  { %309 = vst.msk [vmem:[%s705_s3 + $0x68] sm:$0xff] %vm54_vm0, %v277_v39 }
  0xb7   :  { %v285_v44 = vmax.f32 %v232_v42, 0.0  ;;  %v293_v45 = vmax.f32 %v256_v43, 0.0 }
  0xb8   :  { %v186_v46 = vpop.f32.mrf.mxu0  ;;  %v210_v47 = vpop.f32.mrf.mxu1 }
  0xb9   :  { %317 = vst.msk [vmem:[%s705_s3 + $0xa8] sm:$0xff] %vm54_vm0, %v285_v44  ;;  %v187_v48 = vadd.f32 %v540_v36, %v186_v46  ;;  %v211_v49 = vadd.f32 %v540_v36, %v210_v47 }
  0xba   :  { %325 = vst.msk [vmem:[%s705_s3 + $0xe8] sm:$0xff] %vm54_vm0, %v293_v45 }
  0xbb   :  { %v270_v50 = vmax.f32 %v187_v48, 0.0  ;;  %v278_v51 = vmax.f32 %v211_v49, 0.0 }
  0xbc   :  { %v234_v52 = vpop.f32.mrf.mxu2  ;;  %v258_v53 = vpop.f32.mrf.mxu3 }
  0xbd   :  { %302 = vst.msk [vmem:[%s705_s3 + $0x30] sm:$0xff] %vm54_vm0, %v270_v50  ;;  %v235_v54 = vadd.f32 %v540_v36, %v234_v52  ;;  %v259_v55 = vadd.f32 %v540_v36, %v258_v53 }
  0xbe   :  { %310 = vst.msk [vmem:[%s705_s3 + $0x70] sm:$0xff] %vm54_vm0, %v278_v51 }
  0xbf   :  { %v286_v56 = vmax.f32 %v235_v54, 0.0  ;;  %v294_v57 = vmax.f32 %v259_v55, 0.0 }
  0xc0   :  { %v189_v58 = vpop.f32.mrf.mxu0  ;;  %v213_v59 = vpop.f32.mrf.mxu1 }
  0xc1   :  { %318 = vst.msk [vmem:[%s705_s3 + $0xb0] sm:$0xff] %vm54_vm0, %v286_v56  ;;  %v190_v60 = vadd.f32 %v540_v36, %v189_v58  ;;  %v214_v61 = vadd.f32 %v540_v36, %v213_v59 }
  0xc2   :  { %326 = vst.msk [vmem:[%s705_s3 + $0xf0] sm:$0xff] %vm54_vm0, %v294_v57 }
  0xc3   :  { %v271_v62 = vmax.f32 %v190_v60, 0.0  ;;  %v279_v63 = vmax.f32 %v214_v61, 0.0 }
  0xc4   :  { %v237_v0 = vpop.f32.mrf.mxu2  ;;  %v261_v1 = vpop.f32.mrf.mxu3 }
  0xc5   :  { %303 = vst.msk [vmem:[%s705_s3 + $0x38] sm:$0xff] %vm54_vm0, %v271_v62  ;;  %v238_v2 = vadd.f32 %v540_v36, %v237_v0  ;;  %v262_v3 = vadd.f32 %v540_v36, %v261_v1 }
  0xc6   :  { %311 = vst.msk [vmem:[%s705_s3 + $0x78] sm:$0xff] %vm54_vm0, %v279_v63 }
  0xc7   :  { %v287_v4 = vmax.f32 %v238_v2, 0.0  ;;  %v295_v5 = vmax.f32 %v262_v3, 0.0 }
  0xc9   :  { %319 = vst.msk [vmem:[%s705_s3 + $0xb8] sm:$0xff] %vm54_vm0, %v287_v4 }
  0xca   :  { %327 = vst.msk [vmem:[%s705_s3 + $0xf8] sm:$0xff] %vm54_vm0, %v295_v5 }

</bundles_post_ra>
